<compile_context>
chip_gen: v7x
topology: tpu7x:2x2x1
jax: 0.10.0
libtpu: 0.0.40
codegen_flags: <defaults>
</compile_context>

<pallas_src>
import functools

import jax
import jax.numpy as jnp
from jax.experimental import pallas as pl
from jax.experimental.pallas import tpu as pltpu

LANES = 128      # lane-padded feature width
HID = 128        # hidden width
IN_FEATS = 9
OUT_FEATS = 9


def _round_up(n, m):
    return ((n + m - 1) // m) * m


def _mlp_kernel(x_ref, w_ref, b_ref, o_ref):
    # x_ref: (TB, 128) f32 (cols 9.. are zero)
    # w_ref: (3, 128, 128) bf16  -- [w1_padded, w2, w3_padded]
    # b_ref: (3, 1, 128)  f32    -- [b1, b2, b3_padded]
    x = x_ref[...]

    # fc1 + relu (padded rows of w1 are zero, so lane padding of x is harmless)
    h = jnp.dot(x.astype(jnp.bfloat16), w_ref[0],
                preferred_element_type=jnp.float32) + b_ref[0]
    h = jnp.maximum(h, 0.0)

    # fc2 + relu
    h = jnp.dot(h.astype(jnp.bfloat16), w_ref[1],
                preferred_element_type=jnp.float32) + b_ref[1]
    h = jnp.maximum(h, 0.0)

    # fc3 (no activation); padded cols of w3/b3 are zero -> padded output lanes are 0
    out = jnp.dot(h.astype(jnp.bfloat16), w_ref[2],
                  preferred_element_type=jnp.float32) + b_ref[2]
    o_ref[...] = out.astype(o_ref.dtype)


def pack_params(params):
    """Pack f32 [in,out]-layout weights/biases into lane-padded, fused operands."""
    w1 = jnp.zeros((LANES, HID), jnp.float32).at[:IN_FEATS, :].set(params["w1"])
    w2 = params["w2"]
    w3 = jnp.zeros((HID, LANES), jnp.float32).at[:, :OUT_FEATS].set(params["w3"])
    b1 = params["b1"].reshape(1, HID)
    b2 = params["b2"].reshape(1, HID)
    b3 = jnp.zeros((1, LANES), jnp.float32).at[:, :OUT_FEATS].set(
        params["b3"].reshape(1, OUT_FEATS))
    w_packed = jnp.stack([w1, w2, w3]).astype(jnp.bfloat16)   # (3, 128, 128) bf16
    b_packed = jnp.stack([b1, b2, b3])                        # (3, 1, 128)  f32
    return w_packed, b_packed


@functools.partial(jax.jit, static_argnames=("block_batch",))
def tictactoe_net_forward(x, w_packed, b_packed, *, block_batch=256):
    """x: (B, 9) float32. Returns (B, 9) float32 logits (move scores)."""
    B = x.shape[0]

    # Batch tile: 256 rows fills a v6e/v7x MXU push; small batches use one tile.
    TB = min(block_batch, _round_up(B, 8))
    Bp = _round_up(B, TB)
    nb = Bp // TB

    # Lane- and batch-pad the input with zeros.
    x_pad = jnp.zeros((Bp, LANES), jnp.float32).at[:B, :IN_FEATS].set(x)

    out = pl.pallas_call(
        _mlp_kernel,
        out_shape=jax.ShapeDtypeStruct((Bp, LANES), jnp.float32),
        grid=(nb,),
        in_specs=[
            pl.BlockSpec((TB, LANES), lambda i: (i, 0)),           # x tile per step
            pl.BlockSpec((3, HID, LANES), lambda i: (0, 0, 0)),    # weights resident
            pl.BlockSpec((3, 1, LANES), lambda i: (0, 0, 0)),      # biases resident
        ],
        out_specs=pl.BlockSpec((TB, LANES), lambda i: (i, 0)),
        compiler_params=pltpu.CompilerParams(
            dimension_semantics=("parallel",)),                    # v7x: 2 TCs
    )(x_pad, w_packed, b_packed)

    return out[:B, :OUT_FEATS]


def init_params(key):
    """Deterministic init mirroring nn.Linear's default U(-1/sqrt(fan_in), +1/sqrt(fan_in))."""
    ks = jax.random.split(key, 6)

    def linear(kw, kb, fan_in, fan_out):
        bound = 1.0 / jnp.sqrt(float(fan_in))
        # Stored as [in, out] so the kernel computes x @ W + b (== torch Linear).
        w = jax.random.uniform(kw, (fan_in, fan_out), jnp.float32, -bound, bound)
        b = jax.random.uniform(kb, (1, fan_out), jnp.float32, -bound, bound)
        return w, b

    w1, b1 = linear(ks[0], ks[1], 9, 128)
    w2, b2 = linear(ks[2], ks[3], 128, 128)
    w3, b3 = linear(ks[4], ks[5], 128, 9)
    return {"w1": w1, "b1": b1, "w2": w2, "b2": b2, "w3": w3, "b3": b3}


def _reference_forward(x, w_packed, b_packed):
    """Pure-JAX reference using the same bf16-weight / f32-accumulate math."""
    x_pad = jnp.zeros((x.shape[0], LANES), jnp.float32).at[:, :IN_FEATS].set(x)
    h = jnp.maximum(jnp.dot(x_pad.astype(jnp.bfloat16), w_packed[0],
                            preferred_element_type=jnp.float32) + b_packed[0], 0.0)
    h = jnp.maximum(jnp.dot(h.astype(jnp.bfloat16), w_packed[1],
                            preferred_element_type=jnp.float32) + b_packed[1], 0.0)
    out = jnp.dot(h.astype(jnp.bfloat16), w_packed[2],
                  preferred_element_type=jnp.float32) + b_packed[2]
    return out[:, :OUT_FEATS]


if __name__ == "__main__":
    key = jax.random.PRNGKey(0)
    k_params, k_x = jax.random.split(key)

    params = init_params(k_params)
    w_packed, b_packed = pack_params(params)

    # Batch of 8 flattened 3x3 tic-tac-toe boards (values in {-1, 0, 1}).
    x = jax.random.randint(k_x, (8, 9), -1, 2).astype(jnp.float32)

    out = tictactoe_net_forward(x, w_packed, b_packed)
    out = jax.block_until_ready(out)

    ref = _reference_forward(x, w_packed, b_packed)
    assert out.shape == (8, 9) and out.dtype == jnp.float32
    assert jnp.allclose(out, ref, atol=1e-3, rtol=1e-3), "mismatch vs. reference"
    print("KERNEL_OK")
</pallas_src>

<mosaic_0001>
module attributes {stable_mosaic.version = 11 : i64} {
  func.func @_mlp_kernel(%arg0: i32, %arg1: memref<8x128xf32, #tpu.memory_space<vmem>>, %arg2: memref<3x128x128xbf16, #tpu.memory_space<vmem>>, %arg3: memref<3x1x128xf32, #tpu.memory_space<vmem>>, %arg4: memref<8x128xf32, #tpu.memory_space<vmem>>) attributes {dimension_semantics = [#tpu.dimension_semantics<parallel>], iteration_bounds = array<i64: 1>, scalar_prefetch = 0 : i64, scratch_operands = 0 : i64, tpu.core_type = #tpu.core_type<tc>, window_params = [{transform_indices = @transform_0, window_bounds = array<i64: 8, 128>}, {pipeline_mode = #tpu.pipeline_mode<synchronous>, transform_indices = @transform_1, window_bounds = array<i64: 3, 128, 128>}, {pipeline_mode = #tpu.pipeline_mode<synchronous>, transform_indices = @transform_2, window_bounds = array<i64: 3, 1, 128>}, {transform_indices = @transform_3, window_bounds = array<i64: 8, 128>}]} {
    %c0 = arith.constant 0 : index
    %c0_0 = arith.constant 0 : index
    %0 = vector.load %arg1[%c0, %c0_0] : memref<8x128xf32, #tpu.memory_space<vmem>>, vector<8x128xf32>
    %1 = arith.truncf %0 : vector<8x128xf32> to vector<8x128xbf16>
    %c0_1 = arith.constant 0 : index
    %c0_2 = arith.constant 0 : index
    %c0_3 = arith.constant 0 : index
    %2 = vector.load %arg2[%c0_1, %c0_2, %c0_3] : memref<3x128x128xbf16, #tpu.memory_space<vmem>>, vector<1x128x128xbf16>
    %3 = vector.shape_cast %2 : vector<1x128x128xbf16> to vector<128x128xbf16>
    %cst = arith.constant dense<0.000000e+00> : vector<8x128xf32>
    %4 = tpu.matmul %1, %3, %cst {dimension_numbers = #tpu.dot_dimension_numbers<[1], [0], [0], [1], [0, 0, 1, 1], [], []>} : vector<8x128xbf16>, vector<128x128xbf16>, vector<8x128xf32> -> vector<8x128xf32>
    %c0_4 = arith.constant 0 : index
    %c0_5 = arith.constant 0 : index
    %c0_6 = arith.constant 0 : index
    %5 = vector.load %arg3[%c0_4, %c0_5, %c0_6] : memref<3x1x128xf32, #tpu.memory_space<vmem>>, vector<1x1x128xf32>
    %6 = vector.shape_cast %5 : vector<1x1x128xf32> to vector<1x128xf32>
    %7 = vector.broadcast %6 : vector<1x128xf32> to vector<8x128xf32>
    %8 = arith.addf %4, %7 : vector<8x128xf32>
    %cst_7 = arith.constant 0.000000e+00 : f32
    %9 = vector.broadcast %cst_7 : f32 to vector<8x128xf32>
    %10 = arith.maximumf %8, %9 : vector<8x128xf32>
    %11 = arith.truncf %10 : vector<8x128xf32> to vector<8x128xbf16>
    %c1 = arith.constant 1 : index
    %c0_8 = arith.constant 0 : index
    %c0_9 = arith.constant 0 : index
    %12 = vector.load %arg2[%c1, %c0_8, %c0_9] : memref<3x128x128xbf16, #tpu.memory_space<vmem>>, vector<1x128x128xbf16>
    %13 = vector.shape_cast %12 : vector<1x128x128xbf16> to vector<128x128xbf16>
    %cst_10 = arith.constant dense<0.000000e+00> : vector<8x128xf32>
    %14 = tpu.matmul %11, %13, %cst_10 {dimension_numbers = #tpu.dot_dimension_numbers<[1], [0], [0], [1], [0, 0, 1, 1], [], []>} : vector<8x128xbf16>, vector<128x128xbf16>, vector<8x128xf32> -> vector<8x128xf32>
    %c1_11 = arith.constant 1 : index
    %c0_12 = arith.constant 0 : index
    %c0_13 = arith.constant 0 : index
    %15 = vector.load %arg3[%c1_11, %c0_12, %c0_13] : memref<3x1x128xf32, #tpu.memory_space<vmem>>, vector<1x1x128xf32>
    %16 = vector.shape_cast %15 : vector<1x1x128xf32> to vector<1x128xf32>
    %17 = vector.broadcast %16 : vector<1x128xf32> to vector<8x128xf32>
    %18 = arith.addf %14, %17 : vector<8x128xf32>
    %cst_14 = arith.constant 0.000000e+00 : f32
    %19 = vector.broadcast %cst_14 : f32 to vector<8x128xf32>
    %20 = arith.maximumf %18, %19 : vector<8x128xf32>
    %21 = arith.truncf %20 : vector<8x128xf32> to vector<8x128xbf16>
    %c2 = arith.constant 2 : index
    %c0_15 = arith.constant 0 : index
    %c0_16 = arith.constant 0 : index
    %22 = vector.load %arg2[%c2, %c0_15, %c0_16] : memref<3x128x128xbf16, #tpu.memory_space<vmem>>, vector<1x128x128xbf16>
    %23 = vector.shape_cast %22 : vector<1x128x128xbf16> to vector<128x128xbf16>
    %cst_17 = arith.constant dense<0.000000e+00> : vector<8x128xf32>
    %24 = tpu.matmul %21, %23, %cst_17 {dimension_numbers = #tpu.dot_dimension_numbers<[1], [0], [0], [1], [0, 0, 1, 1], [], []>} : vector<8x128xbf16>, vector<128x128xbf16>, vector<8x128xf32> -> vector<8x128xf32>
    %c2_18 = arith.constant 2 : index
    %c0_19 = arith.constant 0 : index
    %c0_20 = arith.constant 0 : index
    %25 = vector.load %arg3[%c2_18, %c0_19, %c0_20] : memref<3x1x128xf32, #tpu.memory_space<vmem>>, vector<1x1x128xf32>
    %26 = vector.shape_cast %25 : vector<1x1x128xf32> to vector<1x128xf32>
    %27 = vector.broadcast %26 : vector<1x128xf32> to vector<8x128xf32>
    %28 = arith.addf %24, %27 : vector<8x128xf32>
    %c0_21 = arith.constant 0 : index
    %c0_22 = arith.constant 0 : index
    %29 = vector.load %arg4[%c0_21, %c0_22] : memref<8x128xf32, #tpu.memory_space<vmem>>, vector<8x128xf32>
    tpu.vector_store %arg4[%c0_21, %c0_22], %28 {strides = array<i32>} : memref<8x128xf32, #tpu.memory_space<vmem>>, vector<8x128xf32>,
    return
  }
  func.func @transform_0(%arg0: i32) -> (i32, i32) {
    %c0_i32 = arith.constant 0 : i32
    %c0_i32_0 = arith.constant 0 : i32
    return %arg0, %c0_i32 : i32, i32
  }
  func.func @transform_1(%arg0: i32) -> (i32, i32, i32) {
    %c0_i32 = arith.constant 0 : i32
    %c0_i32_0 = arith.constant 0 : i32
    %c0_i32_1 = arith.constant 0 : i32
    %c0_i32_2 = arith.constant 0 : i32
    return %c0_i32, %c0_i32_0, %c0_i32_1 : i32, i32, i32
  }
  func.func @transform_2(%arg0: i32) -> (i32, i32, i32) {
    %c0_i32 = arith.constant 0 : i32
    %c0_i32_0 = arith.constant 0 : i32
    %c0_i32_1 = arith.constant 0 : i32
    %c0_i32_2 = arith.constant 0 : i32
    return %c0_i32, %c0_i32_0, %c0_i32_1 : i32, i32, i32
  }
  func.func @transform_3(%arg0: i32) -> (i32, i32) {
    %c0_i32 = arith.constant 0 : i32
    %c0_i32_0 = arith.constant 0 : i32
    return %arg0, %c0_i32 : i32, i32
  }
}

</mosaic_0001>

<bundles_post_ra>
// kernel: tictactoe_net_forward.1
= control target key start
LH: loop header
LB: loop body
LE: loop exit
PB: predicated region body
PF: predicated region fallthrough
CT: control target
= control target key end

     0   :  { %8 = vsyncpa [#allocation3], 0  ;;  %s675_s0 = inlined_call_operand.vmem [shape: f32[8,128], index: 0, kind: input, shape index: {}]   ;;  %s676_s1 = inlined_call_operand.hbm [shape: bf16[3,128,128], index: 1, kind: input, shape index: {}]   ;;  %s677_s2 = inlined_call_operand.vmem [shape: f32[3,1,128], index: 2, kind: input, shape index: {}]   ;;  %s678_s3 = inlined_call_operand.hbm [shape: f32[8,128], index: 3, kind: output, shape index: {}]  }
   0x1   :  { %9 = vsyncpa [#allocation4], 0  ;;  %s583_s12 = smov [#allocation2]   ;;  %s535_s16 = scalar_lea.hbm %s676_s1, 3072 }
   0x2   :  { %s17_s13 = sshll.u32 %s583_s12, 4  ;;  %p536_p0 = scmp.ne.s32.totalorder %s676_s1, %s535_s16  ;;  %s18_s13 = int_to_ptr.vmem [resolvable:$true] %s17_s13 }
   0x3   :  { %p539_p1 = scmp.lt.u32.totalorder %s535_s16, %s676_s1 }
   0x5   :  { %p541_p2 = pnand %p539_p1, %p536_p0 }
   0x7   :  { %544 = shalt.err (!%p541_p2)
}
   0x8   :  { %s545_s21 = scalar_lea.vmem %s18_s13, 3072  ;;  %p550_p4 = scmp.lt.s32.totalorder %s18_s13, %s18_s13 }
   0x9   :  { %p546_p3 = scmp.ne.s32.totalorder %s18_s13, %s545_s21  ;;  %p551_p5 = scmp.lt.s32.totalorder %s545_s21, %s545_s21 }
   0xb   :  { %p552_p6 = por %p551_p5, %p550_p4 }
   0xd   :  { %p553_p7 = pnand %p552_p6, %p546_p3 }
   0xf   :  { %556 = shalt.err (!%p553_p7)
}
  0x10   :  { %s584_s22 = smov 64   ;;  %s585_s23 = smov 4  }
  0x11   :  { %23 = dma.hbm_to_vmem [thread:$0]  %s676_s1, 3072, %s18_s13, [#allocation3], %s584_s22, %s584_s22, %s585_s23  }
  0x12   :  { %579 = dma.done.wait [#allocation3], 3072  }
  0x13   :  { %580 = vsyncadd [#allocation3], 4294964224  ;;  %v586_v0 = vmov 0.0   ;;  %vm587_vm0 = vmmov 0   ;;  %v511_v1 = vld [vmem:[#allocation2] sm:$0xff]   ;;  %v512_v2 = vld [vmem:[#allocation2 + $0x8] sm:$0xff]  }
  0x14   :  { %445 = vmatprep.subr.bf16.mxu0 %v586_v0  ;;  %461 = vmatprep.mubr.msk.bf16.mxu0 %vm587_vm0, %v586_v0  ;;  %v513_v3 = vld [vmem:[#allocation2 + $0x10] sm:$0xff]   ;;  %v519_v4 = vld [vmem:[#allocation2 + $0x40] sm:$0xff]   ;;  %v514_v5 = vld [vmem:[#allocation2 + $0x18] sm:$0xff]   ;;  %s588_s5 = smov [#allocation5]  }
  0x15   :  { %465 = vmatprep.subr.bf16.mxu1 %v586_v0  ;;  %481 = vmatprep.mubr.msk.bf16.mxu1 %vm587_vm0, %v586_v0  ;;  %v520_v6 = vld [vmem:[#allocation2 + $0x48] sm:$0xff]   ;;  %v515_v7 = vld [vmem:[#allocation2 + $0x20] sm:$0xff]   ;;  %v521_v8 = vld [vmem:[#allocation2 + $0x50] sm:$0xff]   ;;  %s380_s6 = sshll.u32 %s588_s5, 4  ;;  %s381_s6 = int_to_ptr.vmem [resolvable:$true] %s380_s6 }
  0x16   :  { %446 = vmatpush3.bf16.msra.mxu0 %v511_v1  ;;  %466 = vmatpush3.bf16.msra.mxu1 %v519_v4  ;;  %v516_v9 = vld [vmem:[#allocation2 + $0x28] sm:$0xff]   ;;  %v522_v10 = vld [vmem:[#allocation2 + $0x58] sm:$0xff]   ;;  %v517_v11 = vld [vmem:[#allocation2 + $0x30] sm:$0xff]   ;;  %s557_s7 = scalar_lea.vmem %s381_s6, 128  ;;  %p562_p9 = scmp.lt.s32.totalorder %s381_s6, %s381_s6 }
  0x17   :  { %447 = vmatprep.subr.bf16.mxu0 %v586_v0  ;;  %467 = vmatprep.subr.bf16.mxu1 %v586_v0  ;;  %v523_v12 = vld [vmem:[#allocation2 + $0x60] sm:$0xff]   ;;  %v518_v13 = vld [vmem:[#allocation2 + $0x38] sm:$0xff]   ;;  %v524_v15 = vld [vmem:[#allocation2 + $0x68] sm:$0xff]   ;;  %p558_p8 = scmp.ne.s32.totalorder %s381_s6, %s557_s7  ;;  %p563_p10 = scmp.lt.s32.totalorder %s557_s7, %s557_s7 }
  0x18   :  { %v30_v14 = vld [vmem:[%s675_s0] sm:$0xff]  ;;  %v525_v17 = vld [vmem:[#allocation2 + $0x70] sm:$0xff]   ;;  %v526_v18 = vld [vmem:[#allocation2 + $0x78] sm:$0xff]  }
  0x19   :  { %v31_v16 = vpack.c.bf16 %v30_v14, %v30_v14  ;;  %v527_v19 = vld [vmem:[#allocation2 + $0x80] sm:$0xff]   ;;  %v528_v20 = vld [vmem:[#allocation2 + $0x88] sm:$0xff]   ;;  %v529_v21 = vld [vmem:[#allocation2 + $0x90] sm:$0xff]   ;;  %p564_p11 = por %p563_p10, %p562_p9 }
  0x1a   :  { %448 = vmatpush3.bf16.msra.mxu0 %v512_v2  ;;  %468 = vmatpush3.bf16.msra.mxu1 %v520_v6  ;;  %v530_v22 = vld [vmem:[#allocation2 + $0x98] sm:$0xff]   ;;  %v531_v23 = vld [vmem:[#allocation2 + $0xa0] sm:$0xff]   ;;  %v532_v24 = vld [vmem:[#allocation2 + $0xa8] sm:$0xff]  }
  0x1b   :  { %449 = vmatprep.subr.bf16.mxu0 %v586_v0  ;;  %469 = vmatprep.subr.bf16.mxu1 %v586_v0  ;;  %v389_v25 = vld [vmem:[%s677_s2] ss:$0 sm:$0xff]  ;;  %v533_v33 = vld [vmem:[#allocation2 + $0xb0] sm:$0xff]   ;;  %v534_v34 = vld [vmem:[#allocation2 + $0xb8] sm:$0xff]   ;;  %p565_p12 = pnand %p564_p11, %p558_p8 }
  0x1c   :  { %v399_v35 = vld [vmem:[%s677_s2 + $0x1] ss:$0 sm:$0xff]  ;;  %v409_v43 = vld [vmem:[%s677_s2 + $0x2] ss:$0 sm:$0xff] }
  0x1e   :  { %450 = vmatpush3.bf16.msra.mxu0 %v513_v3  ;;  %470 = vmatpush3.bf16.msra.mxu1 %v521_v8 }
  0x1f   :  { %451 = vmatprep.subr.bf16.mxu0 %v586_v0  ;;  %471 = vmatprep.subr.bf16.mxu1 %v586_v0 }
  0x22   :  { %452 = vmatpush3.bf16.msra.mxu0 %v514_v5  ;;  %472 = vmatpush3.bf16.msra.mxu1 %v522_v10 }
  0x23   :  { %453 = vmatprep.subr.bf16.mxu0 %v586_v0  ;;  %473 = vmatprep.subr.bf16.mxu1 %v586_v0 }
  0x26   :  { %454 = vmatpush3.bf16.msra.mxu0 %v515_v7  ;;  %474 = vmatpush3.bf16.msra.mxu1 %v523_v12 }
  0x27   :  { %455 = vmatprep.subr.bf16.mxu0 %v586_v0  ;;  %475 = vmatprep.subr.bf16.mxu1 %v586_v0 }
  0x2a   :  { %456 = vmatpush3.bf16.msra.mxu0 %v516_v9  ;;  %476 = vmatpush3.bf16.msra.mxu1 %v524_v15 }
  0x2b   :  { %457 = vmatprep.subr.bf16.mxu0 %v586_v0  ;;  %477 = vmatprep.subr.bf16.mxu1 %v586_v0 }
  0x2e   :  { %458 = vmatpush3.bf16.msra.mxu0 %v517_v11  ;;  %478 = vmatpush3.bf16.msra.mxu1 %v525_v17 }
  0x2f   :  { %459 = vmatprep.subr.bf16.mxu0 %v586_v0  ;;  %479 = vmatprep.subr.bf16.mxu1 %v586_v0 }
  0x32   :  { %460 = vmatpush3.bf16.msra.mxu0 %v518_v13  ;;  %480 = vmatpush3.bf16.msra.mxu1 %v526_v18 }
  0x33   :  { %485 = vmatprep.subr.bf16.mxu0 %v586_v0 }
  0x35   :  { %462 = vmatmul.mubr.bf16.vlgmr.msra.gmra.mrb[0].mxu0 %v31_v16 }
  0x36   :  { %501 = vmatprep.mubr.msk.bf16.mxu0 %vm587_vm0, %v586_v0  ;;  %486 = vmatpush3.bf16.msra.mxu0 %v527_v19 }
  0x37   :  { %487 = vmatprep.subr.bf16.mxu0 %v586_v0 }
  0x3a   :  { %488 = vmatpush3.bf16.msra.mxu0 %v528_v20 }
  0x3b   :  { %489 = vmatprep.subr.bf16.mxu0 %v586_v0 }
  0x3e   :  { %490 = vmatpush3.bf16.msra.mxu0 %v529_v21 }
  0x3f   :  { %491 = vmatprep.subr.bf16.mxu0 %v586_v0 }
  0x42   :  { %492 = vmatpush3.bf16.msra.mxu0 %v530_v22 }
  0x43   :  { %493 = vmatprep.subr.bf16.mxu0 %v586_v0 }
  0x46   :  { %494 = vmatpush3.bf16.msra.mxu0 %v531_v23 }
  0x47   :  { %495 = vmatprep.subr.bf16.mxu0 %v586_v0 }
  0x4a   :  { %496 = vmatpush3.bf16.msra.mxu0 %v532_v24 }
  0x4b   :  { %497 = vmatprep.subr.bf16.mxu0 %v586_v0 }
  0x4e   :  { %498 = vmatpush3.bf16.msra.mxu0 %v533_v33 }
  0x4f   :  { %499 = vmatprep.subr.bf16.mxu0 %v586_v0 }
  0x52   :  { %500 = vmatpush3.bf16.msra.mxu0 %v534_v34 }
 0x108   :  { %v137_v26 = vpop.f32.mrb[0].mxu0 }
 0x109   :  { %v138_v27 = vadd.f32 %v389_v25, %v137_v26  ;;  %v463_v28 = vpop.f32.mrb[1].mxu0 }
 0x10a   :  { %v140_v29 = vpop.f32.mrb[2].mxu0 }
 0x10b   :  { %v143_v30 = vmax.f32 %v138_v27, 0.0  ;;  %v464_v31 = vpop.f32.mrb[3].mxu0 }
 0x10d   :  { %v144_v32 = vpack.c.bf16 %v143_v30, %v143_v30 }
 0x10f   :  { %482 = vmatmul.mubr.bf16.vlgmr.msra.gmra.mrb[0].mxu1 %v144_v32 }
 0x1e2   :  { %v252_v36 = vpop.f32.mrb[0].mxu1 }
 0x1e3   :  { %v253_v37 = vadd.f32 %v399_v35, %v252_v36  ;;  %v483_v38 = vpop.f32.mrb[1].mxu1 }
 0x1e4   :  { %v255_v39 = vpop.f32.mrb[2].mxu1 }
 0x1e5   :  { %v258_v40 = vmax.f32 %v253_v37, 0.0  ;;  %v484_v41 = vpop.f32.mrb[3].mxu1 }
 0x1e7   :  { %v259_v42 = vpack.c.bf16 %v258_v40, %v258_v40 }
 0x1e9   :  { %502 = vmatmul.mubr.bf16.vlgmr.msra.gmra.mrb[4].mxu0 %v259_v42 }
 0x2bc   :  { %v367_v44 = vpop.f32.mrb[4].mxu0 }
 0x2bd   :  { %v368_v45 = vadd.f32 %v409_v43, %v367_v44  ;;  %v503_v46 = vpop.f32.mrb[5].mxu0 }
 0x2be   :  { %v370_v47 = vpop.f32.mrb[6].mxu0 }
 0x2bf   :  { %373 = vst [vmem:[#allocation5] sm:$0xff] %v368_v45  ;;  %v504_v48 = vpop.f32.mrb[7].mxu0 }
 0x2c0   :  { %568 = shalt.err (!%p565_p12)
}
 0x2c1   :  { %s569_s2 = scalar_lea.hbm %s678_s3, 128 }
 0x2c2   :  { %p570_p13 = scmp.ne.s32.totalorder %s678_s3, %s569_s2  ;;  %p573_p0 = scmp.lt.u32.totalorder %s569_s2, %s678_s3 }
 0x2c4   :  { %p575_p1 = pnand %p573_p0, %p570_p13 }
 0x2c6   :  { %578 = shalt.err (!%p575_p1)
}
 0x2c7   :  { %383 = dma.vmem_to_hbm [thread:$0]  %s381_s6, 128, %s678_s3, [#allocation4]  }
 0x2c8   :  { %581 = dma.done.wait [#allocation4], 128  }
 0x2c9   :  { %582 = vsyncadd [#allocation4], 4294967168 }
 0x2ca   :  { %387 = vsyncpa [#allocation3], 1 }
 0x2cb   :  { %388 = vsyncpa [#allocation4], 1 }

</bundles_post_ra>
